<compile_context>
chip_gen: v7x
topology: tpu7x:2x2x1
jax: 0.10.0
libtpu: 0.0.40
codegen_flags: <defaults>
</compile_context>

<pallas_src>
import itertools

import jax
import jax.numpy as jnp
from jax.experimental import pallas as pl
from jax.experimental.pallas import tpu as pltpu


def _bilinear_kernel(x_ref, wcol_ref, left_ref, right_ref, o_ref):
    # x_ref:     (TB, S, D)  block of inputs
    # wcol_ref:  (1, D)      weight[:, 0] (only column that reaches the output)
    # left_ref:  (S, P)      one-hot selector (transposed) for the left field
    # right_ref: (S, P)      one-hot selector (transposed) for the right field
    # o_ref:     (TB, P)     lane-dense output block
    x = x_ref[...]                                              # (TB, S, D)
    wcol = wcol_ref[...]                                        # (1, D)

    # attn[:, :, 0] = inputs @ weight[:, 0]  -> (TB, S)   (VPU mul + lane reduce)
    a = jnp.sum(x * wcol[:, None, :], axis=-1)                  # (TB, S)
    # inputs[:, :, 0]                       -> (TB, S)
    x0 = x[:, :, 0]                                             # (TB, S)

    # Pair gather via one-hot matmuls (exact for one-hot selectors), producing
    # a lane-dense (TB, P) result directly on the MXU.
    left = jnp.dot(a, left_ref[...],
                   preferred_element_type=jnp.float32)          # (TB, P)
    right = jnp.dot(x0, right_ref[...],
                    preferred_element_type=jnp.float32)         # (TB, P)

    o_ref[...] = (left * right).astype(o_ref.dtype)             # (TB, P)


def _pick_tb(B, S, D, itemsize=4, budget_bytes=8 * 1024 * 1024):
    """Batch-tile size: as large as a per-buffer VMEM budget allows, dividing B."""
    tb = max(1, budget_bytes // max(1, S * D * itemsize))
    tb = min(tb, B)
    while B % tb != 0:       # keep blocks exact (small B in practice)
        tb -= 1
    return tb


def bilinear_interaction(inputs, weight):
    """inputs: (B, S, D); weight: (D, D) -> (B, S*(S-1)//2, 1)"""
    B, S, D = inputs.shape
    pairs = list(itertools.combinations(range(S), 2))
    P = len(pairs)
    left_idx = jnp.asarray([i for i, _ in pairs], dtype=jnp.int32)
    right_idx = jnp.asarray([j for _, j in pairs], dtype=jnp.int32)
    # Transposed one-hot selectors: (S, P) so P lands on the lane axis of the result.
    left_ohT = jax.nn.one_hot(left_idx, S, dtype=inputs.dtype).T     # (S, P)
    right_ohT = jax.nn.one_hot(right_idx, S, dtype=inputs.dtype).T   # (S, P)
    # Only column 0 of the weight ever reaches the output.
    wcol = weight[:, 0][None, :]                                      # (1, D)

    TB = _pick_tb(B, S, D, inputs.dtype.itemsize)
    grid = (B // TB,)

    out = pl.pallas_call(
        _bilinear_kernel,
        out_shape=jax.ShapeDtypeStruct((B, P), inputs.dtype),
        grid_spec=pltpu.PrefetchScalarGridSpec(
            num_scalar_prefetch=0,
            grid=grid,
            in_specs=[
                pl.BlockSpec((TB, S, D), lambda b: (b, 0, 0)),   # inputs (streamed)
                pl.BlockSpec((1, D), lambda b: (0, 0)),          # weight[:, 0] (resident)
                pl.BlockSpec((S, P), lambda b: (0, 0)),          # left one-hot^T (resident)
                pl.BlockSpec((S, P), lambda b: (0, 0)),          # right one-hot^T (resident)
            ],
            out_specs=pl.BlockSpec((TB, P), lambda b: (b, 0)),
        ),
        compiler_params=pltpu.CompilerParams(
            dimension_semantics=("parallel",)),
    )(inputs, wcol, left_ohT, right_ohT)

    # Match the PyTorch module's output shape (B, P, 1).
    return out[:, :, None]


def _reference(inputs, weight):
    # Pure-JAX reference mirroring the PyTorch forward (gather keeps col 0 only).
    B, S, D = inputs.shape
    pairs = list(itertools.combinations(range(S), 2))
    left = jnp.asarray([i for i, _ in pairs])
    right = jnp.asarray([j for _, j in pairs])
    attn = jnp.einsum("bsd,de->bse", inputs, weight)
    emb_left = attn[:, left, 0:1]                                     # (B, P, 1)
    emb_right = inputs[:, right, 0:1]                                 # (B, P, 1)
    return emb_left * emb_right


if __name__ == "__main__":
    key = jax.random.PRNGKey(0)
    k_x, k_w = jax.random.split(key)

    batch, seq_len, dim = 2, 8, 32                                    # small test shapes
    x = jax.random.normal(k_x, (batch, seq_len, dim), dtype=jnp.float32)

    # Deterministic xavier_normal_ init for weight (dim, dim): std = sqrt(2/(fan_in+fan_out)).
    xavier_std = (2.0 / (dim + dim)) ** 0.5
    weight = xavier_std * jax.random.normal(k_w, (dim, dim), dtype=jnp.float32)

    out = bilinear_interaction(x, weight)
    out = jax.block_until_ready(out)

    ref = _reference(x, weight)
    assert out.shape == (batch, seq_len * (seq_len - 1) // 2, 1), out.shape
    assert jnp.allclose(out, ref, atol=1e-5, rtol=1e-5), float(jnp.max(jnp.abs(out - ref)))

    print("KERNEL_OK")
</pallas_src>

<mosaic_0001>
module attributes {stable_mosaic.version = 11 : i64} {
  func.func @_bilinear_kernel(%arg0: i32, %arg1: memref<2x8x32xf32, #tpu.memory_space<vmem>>, %arg2: memref<1x32xf32, #tpu.memory_space<vmem>>, %arg3: memref<8x28xf32, #tpu.memory_space<vmem>>, %arg4: memref<8x28xf32, #tpu.memory_space<vmem>>, %arg5: memref<2x28xf32, #tpu.memory_space<vmem>>) attributes {dimension_semantics = [#tpu.dimension_semantics<parallel>], iteration_bounds = array<i64: 1>, scalar_prefetch = 0 : i64, scratch_operands = 0 : i64, tpu.core_type = #tpu.core_type<tc>, window_params = [{transform_indices = @transform_0, window_bounds = array<i64: 2, 8, 32>}, {pipeline_mode = #tpu.pipeline_mode<synchronous>, transform_indices = @transform_1, window_bounds = array<i64: 1, 32>}, {pipeline_mode = #tpu.pipeline_mode<synchronous>, transform_indices = @transform_2, window_bounds = array<i64: 8, 28>}, {pipeline_mode = #tpu.pipeline_mode<synchronous>, transform_indices = @transform_3, window_bounds = array<i64: 8, 28>}, {transform_indices = @transform_4, window_bounds = array<i64: 2, 28>}]} {
    %c0 = arith.constant 0 : index
    %c0_0 = arith.constant 0 : index
    %c0_1 = arith.constant 0 : index
    %0 = vector.load %arg1[%c0, %c0_0, %c0_1] : memref<2x8x32xf32, #tpu.memory_space<vmem>>, vector<2x8x32xf32>
    %c0_2 = arith.constant 0 : index
    %c0_3 = arith.constant 0 : index
    %1 = vector.load %arg2[%c0_2, %c0_3] : memref<1x32xf32, #tpu.memory_space<vmem>>, vector<1x32xf32>
    %2 = vector.shape_cast %1 : vector<1x32xf32> to vector<1x1x32xf32>
    %3 = vector.broadcast %2 : vector<1x1x32xf32> to vector<2x8x32xf32>
    %4 = arith.mulf %0, %3 : vector<2x8x32xf32>
    %cst = arith.constant dense<0.000000e+00> : vector<2x8xf32>
    %5 = vector.multi_reduction <add>, %4, %cst [2] : vector<2x8x32xf32> to vector<2x8xf32>
    %6 = vector.extract_strided_slice %0 {offsets = [0, 0, 0], sizes = [2, 8, 1], strides = [1, 1, 1]} : vector<2x8x32xf32> to vector<2x8x1xf32>
    %7 = vector.shape_cast %6 : vector<2x8x1xf32> to vector<2x8xf32>
    %c0_4 = arith.constant 0 : index
    %c0_5 = arith.constant 0 : index
    %8 = vector.load %arg3[%c0_4, %c0_5] : memref<8x28xf32, #tpu.memory_space<vmem>>, vector<8x28xf32>
    %cst_6 = arith.constant dense<0.000000e+00> : vector<2x28xf32>
    %9 = tpu.matmul %5, %8, %cst_6 {dimension_numbers = #tpu.dot_dimension_numbers<[1], [0], [0], [1], [0, 0, 1, 1], [], []>} : vector<2x8xf32>, vector<8x28xf32>, vector<2x28xf32> -> vector<2x28xf32>
    %c0_7 = arith.constant 0 : index
    %c0_8 = arith.constant 0 : index
    %10 = vector.load %arg4[%c0_7, %c0_8] : memref<8x28xf32, #tpu.memory_space<vmem>>, vector<8x28xf32>
    %cst_9 = arith.constant dense<0.000000e+00> : vector<2x28xf32>
    %11 = tpu.matmul %7, %10, %cst_9 {dimension_numbers = #tpu.dot_dimension_numbers<[1], [0], [0], [1], [0, 0, 1, 1], [], []>} : vector<2x8xf32>, vector<8x28xf32>, vector<2x28xf32> -> vector<2x28xf32>
    %12 = arith.mulf %9, %11 : vector<2x28xf32>
    %c0_10 = arith.constant 0 : index
    %c0_11 = arith.constant 0 : index
    %13 = vector.load %arg5[%c0_10, %c0_11] : memref<2x28xf32, #tpu.memory_space<vmem>>, vector<2x28xf32>
    tpu.vector_store %arg5[%c0_10, %c0_11], %12 {strides = array<i32>} : memref<2x28xf32, #tpu.memory_space<vmem>>, vector<2x28xf32>,
    return
  }
  func.func @transform_0(%arg0: i32) -> (i32, i32, i32) {
    %c0_i32 = arith.constant 0 : i32
    %c0_i32_0 = arith.constant 0 : i32
    %c0_i32_1 = arith.constant 0 : i32
    return %arg0, %c0_i32, %c0_i32_0 : i32, i32, i32
  }
  func.func @transform_1(%arg0: i32) -> (i32, i32) {
    %c0_i32 = arith.constant 0 : i32
    %c0_i32_0 = arith.constant 0 : i32
    %c0_i32_1 = arith.constant 0 : i32
    return %c0_i32, %c0_i32_0 : i32, i32
  }
  func.func @transform_2(%arg0: i32) -> (i32, i32) {
    %c0_i32 = arith.constant 0 : i32
    %c0_i32_0 = arith.constant 0 : i32
    %c0_i32_1 = arith.constant 0 : i32
    return %c0_i32, %c0_i32_0 : i32, i32
  }
  func.func @transform_3(%arg0: i32) -> (i32, i32) {
    %c0_i32 = arith.constant 0 : i32
    %c0_i32_0 = arith.constant 0 : i32
    %c0_i32_1 = arith.constant 0 : i32
    return %c0_i32, %c0_i32_0 : i32, i32
  }
  func.func @transform_4(%arg0: i32) -> (i32, i32) {
    %c0_i32 = arith.constant 0 : i32
    %c0_i32_0 = arith.constant 0 : i32
    return %arg0, %c0_i32 : i32, i32
  }
}

</mosaic_0001>

<bundles_post_ra>
// kernel: tpu_custom_call.1
= control target key start
LH: loop header
LB: loop body
LE: loop exit
PB: predicated region body
PF: predicated region fallthrough
CT: control target
= control target key end

     0   :  { %9 = vsyncpa [#allocation3], 0  ;;  %s433_s0 = inlined_call_operand.hbm [shape: f32[2,8,32], index: 0, kind: input, shape index: {}]   ;;  %s434_s1 = inlined_call_operand.vmem [shape: f32[1,32], index: 1, kind: input, shape index: {}]   ;;  %s435_s2 = inlined_call_operand.hbm [shape: f32[8,28], index: 2, kind: input, shape index: {}]   ;;  %s436_s3 = inlined_call_operand.vmem [shape: f32[8,28], index: 3, kind: input, shape index: {}]   ;;  %s437_s4 = inlined_call_operand.hbm [shape: f32[2,28], index: 4, kind: output, shape index: {}]  }
   0x1   :  { %10 = vsyncpa [#allocation6], 0 }
   0x2   :  { %11 = vsyncpa [#allocation4], 0  ;;  %s358_s15 = smov [#allocation2]   ;;  %s286_s19 = scalar_lea.hbm %s433_s0, 256 }
   0x3   :  { %s17_s16 = sshll.u32 %s358_s15, 4  ;;  %p287_p0 = scmp.ne.s32.totalorder %s433_s0, %s286_s19  ;;  %s18_s16 = int_to_ptr.vmem [resolvable:$true] %s17_s16 }
   0x4   :  { %p290_p1 = scmp.lt.u32.totalorder %s286_s19, %s433_s0 }
   0x6   :  { %p292_p2 = pnand %p290_p1, %p287_p0 }
   0x8   :  { %295 = shalt.err (!%p292_p2)
}
   0x9   :  { %s296_s24 = scalar_lea.vmem %s18_s16, 256  ;;  %p301_p4 = scmp.lt.s32.totalorder %s18_s16, %s18_s16 }
   0xa   :  { %p297_p3 = scmp.ne.s32.totalorder %s18_s16, %s296_s24  ;;  %p302_p5 = scmp.lt.s32.totalorder %s296_s24, %s296_s24 }
   0xc   :  { %p303_p6 = por %p302_p5, %p301_p4 }
   0xe   :  { %p304_p7 = pnand %p303_p6, %p297_p3 }
  0x10   :  { %307 = shalt.err (!%p304_p7)
}
  0x11   :  { %s359_s25 = smov 128   ;;  %s360_s26 = smov 8  }
  0x12   :  { %23 = dma.hbm_to_vmem [thread:$0]  %s433_s0, 256, %s18_s16, [#allocation3], %s359_s25, %s359_s25, %s360_s26  }
  0x13   :  { %s361_s29 = smov [#allocation5]   ;;  %s308_s7 = scalar_lea.hbm %s435_s2, 128 }
  0x14   :  { %s32_s30 = sshll.u32 %s361_s29, 4  ;;  %p309_p8 = scmp.ne.s32.totalorder %s435_s2, %s308_s7  ;;  %s33_s30 = int_to_ptr.vmem [resolvable:$true] %s32_s30 }
  0x15   :  { %p312_p9 = scmp.lt.u32.totalorder %s308_s7, %s435_s2 }
  0x17   :  { %p314_p10 = pnand %p312_p9, %p309_p8 }
  0x19   :  { %317 = shalt.err (!%p314_p10)
}
  0x1a   :  { %s318_s12 = scalar_lea.vmem %s33_s30, 128  ;;  %p323_p12 = scmp.lt.s32.totalorder %s33_s30, %s33_s30 }
  0x1b   :  { %p319_p11 = scmp.ne.s32.totalorder %s33_s30, %s318_s12  ;;  %p324_p13 = scmp.lt.s32.totalorder %s318_s12, %s318_s12 }
  0x1d   :  { %p325_p0 = por %p324_p13, %p323_p12 }
  0x1f   :  { %p326_p1 = pnand %p325_p0, %p319_p11 }
  0x21   :  { %329 = shalt.err (!%p326_p1)
}
  0x22   :  { %35 = dma.hbm_to_vmem [thread:$0]  %s435_s2, 128, %s33_s30, [#allocation6]  }
  0x23   :  { %352 = dma.done.wait [#allocation3], 256  }
  0x24   :  { %353 = vsyncadd [#allocation3], 4294967040 }
  0x25   :  { %354 = dma.done.wait [#allocation6], 128  }
  0x26   :  { %355 = vsyncadd [#allocation6], 4294967168  ;;  %v362_v0 = vmov 0   ;;  %v44_v1 = vld [vmem:[#allocation2] sm:$0xff]  ;;  %vm55_vm0 = vcmask 261120   ;;  %v45_v3 = vld [vmem:[#allocation2 + $0x8] sm:$0xff]  ;;  %v65_v11 = vlaneseq }
  0x27   :  { %284 = vset.pattern.permute.xlu1 %v362_v0  ;;  %285 = vset.pattern.permute.xlu0 %v362_v0  ;;  %v259_v2 = vld [vmem:[%s434_s1] ss:$0 sm:$0xff]  ;;  %v363_v8 = vmov 0.0   ;;  %vm364_vm1 = vmmov 0   ;;  %v62_v10 = vld [vmem:[#allocation5] sm:$0xff]  ;;  %vm75_vm2 = vcmask 1041409  }
  0x28   :  { %v53_v4 = vmul.f32 %v259_v2, %v44_v1  ;;  %v54_v5 = vmul.f32 %v259_v2, %v45_v3  ;;  %154 = vperm.xlu1 %284, %v44_v1   ;;  %271 = vmatprep.subr.mxu1 %v363_v8  ;;  %v150_v9 = vld [vmem:[%s436_s3] sm:$0xff]  ;;  %v66_v12 = vand.u32 127, %v65_v11  ;;  %v68_v13 = vshrl.u32 %v65_v11, 7  ;;  %s365_s1 = smov [#allocation7]  }
  0x29   :  { %266 = vmatprep.subr.mxu0 %v363_v8  ;;  %272 = vmatpush3.msra.mxu1 %v150_v9  ;;  %vm77_vm3 = vcmask 64512   ;;  %s249_s3 = sshll.u32 %s365_s1, 4  ;;  %vm241_vm4 = vcmask 222208   ;;  %s250_s3 = int_to_ptr.vmem [resolvable:$true] %s249_s3 }
  0x2a   :  { %v56_v6 = vsel %vm55_vm0, %v53_v4, 0.0  ;;  %v59_v7 = vsel %vm55_vm0, %v54_v5, 0.0  ;;  %273 = vmatprep.mubr.msk.f32.mxu1 %vm364_vm1, %v363_v8  ;;  %268 = vmatprep.mubr.msk.f32.mxu0 %vm364_vm1, %v363_v8  ;;  %v69_v14 = vsub.s32 %v66_v12, %v68_v13  ;;  %s330_s17 = scalar_lea.vmem %s250_s3, 32  ;;  %p335_p3 = scmp.lt.s32.totalorder %s250_s3, %s250_s3 }
  0x2b   :  { %57 = vadd.xlane.f32.xlu0 %v56_v6  ;;  %267 = vmatpush3.msra.mxu0 %v62_v10  ;;  %p331_p2 = scmp.ne.s32.totalorder %s250_s3, %s330_s17  ;;  %p336_p4 = scmp.lt.s32.totalorder %s330_s17, %s330_s17 }
  0x2c   :  { %157 = vperm.xlu1 %284, %v45_v3  }
  0x2d   :  { %p337_p5 = por %p336_p4, %p335_p3 }
  0x2f   :  { %60 = vadd.xlane.f32.xlu0 %v59_v7  ;;  %p338_p6 = pnand %p337_p5, %p331_p2 }
  0xa7   :  { %v155_v15 = vpop.permute.xlu1 %154 }
  0xa8   :  { %v162_v16 = vrot.slane %v155_v15, %v69_v14 }
  0xab   :  { %v158_v17 = vpop.permute.xlu1 %157 }
  0xac   :  { %v166_v18 = vrot.slane %v158_v17, %v69_v14 }
  0xae   :  { %v167_v19 = vsel %vm75_vm2, %v166_v18, %v162_v16 }
  0xaf   :  { %274 = vmatmul.mubr.msk.f32.vlgmr.msra.gmra.mrb[0].mxu1 %vm77_vm3, %v167_v19 }
  0xb8   :  { %v58_v20 = vpop.xlane.xlu0 %57 }
  0xb9   :  { %v70_v22 = vrot.slane %v58_v20, %v69_v14 }
  0xbc   :  { %v61_v21 = vpop.xlane.xlu0 %60 }
  0xbd   :  { %v74_v23 = vrot.slane %v61_v21, %v69_v14 }
  0xbf   :  { %v76_v24 = vsel %vm75_vm2, %v74_v23, %v70_v22 }
  0xc0   :  { %269 = vmatmul.mubr.msk.f32.vlgmr.msra.gmra.mrb[0].mxu0 %vm77_vm3, %v76_v24 }
 0x182   :  { %v236_v25 = vpop.f32.mrb[0].mxu1 }
 0x183   :  { %v275_v26 = vpop.f32.mrb[1].mxu1 }
 0x193   :  { %v146_v27 = vpop.f32.mrb[0].mxu0 }
 0x194   :  { %v240_v28 = vmul.f32 %v236_v25, %v146_v27  ;;  %v270_v29 = vpop.f32.mrb[1].mxu0 }
 0x196   :  { %242 = vst.msk [vmem:[#allocation7] sm:$0x3] %vm241_vm4, %v240_v28 }
 0x197   :  { %341 = shalt.err (!%p338_p6)
}
 0x198   :  { %s342_s20 = scalar_lea.hbm %s437_s4, 32 }
 0x199   :  { %p343_p7 = scmp.ne.s32.totalorder %s437_s4, %s342_s20  ;;  %p346_p8 = scmp.lt.u32.totalorder %s342_s20, %s437_s4 }
 0x19b   :  { %p348_p9 = pnand %p346_p8, %p343_p7 }
 0x19d   :  { %351 = shalt.err (!%p348_p9)
}
 0x19e   :  { %252 = dma.vmem_to_hbm [thread:$0]  %s250_s3, 32, %s437_s4, [#allocation4]  }
 0x19f   :  { %356 = dma.done.wait [#allocation4], 32  }
 0x1a0   :  { %357 = vsyncadd [#allocation4], 4294967264 }
 0x1a1   :  { %256 = vsyncpa [#allocation3], 1 }
 0x1a2   :  { %257 = vsyncpa [#allocation6], 1 }
 0x1a3   :  { %258 = vsyncpa [#allocation4], 1 }

</bundles_post_ra>
